<compile_context>
chip_gen: v6e
topology: v6e:2x2x1
jax: 0.10.0
libtpu: 0.0.40
codegen_flags: <defaults>
</compile_context>

<pallas_src>
import jax
import jax.numpy as jnp
from jax.experimental import pallas as pl
from jax.experimental.pallas import tpu as pltpu

LANE = 128
SUBLANE = 8
MAX_ROW_TILE = 2048   # VMEM budget: sized against v7x (64 MiB physical / 32 MiB scoped)


def _round_up(n, m):
    return (n + m - 1) // m * m


def _pick_row_tile(t_len, cap=MAX_ROW_TILE):
    """Largest multiple of 8 that divides t_len and is <= cap; else the full t_len."""
    bt = min(t_len, cap)
    bt -= bt % SUBLANE
    while bt >= SUBLANE and t_len % bt != 0:
        bt -= SUBLANE
    return bt if (bt >= SUBLANE and t_len % bt == 0) else t_len


# ----------------------------------------------------------------------------
# Pallas kernel: fused  (bt, D) @ (D, Hp) + per-batch bias -> GELU -> @ (Hp, Dp) + bout
# x keeps its true (narrow) feature width D; only the output side is 128-lane dense.
# ----------------------------------------------------------------------------
def _fused_mlp_kernel(x_ref, bias_ref, win_ref, wout_ref, bout_ref, out_ref):
    # Matmul 1: bf16 operands on the MXU, f32 accumulation.  K = true D (no padding).
    x = x_ref[...].astype(win_ref.dtype)                                   # (bt, D)
    h = jnp.dot(x, win_ref[...], preferred_element_type=jnp.float32)       # (bt, Hp) f32
    # Single fused per-batch additive bias (input-proj bias + time emb + pooled cond),
    # precomputed outside the kernel; (1, Hp) broadcasts over the row tile.
    h = h + bias_ref[...]
    # TODO(synk): tanh-approx GELU (EUP-friendly); PyTorch nn.GELU default is exact erf.
    h = jax.nn.gelu(h)
    # Matmul 2: cast activations to bf16 for the MXU, accumulate in f32.
    out = jnp.dot(h.astype(wout_ref.dtype), wout_ref[...],
                  preferred_element_type=jnp.float32)                      # (bt, Dp)
    out_ref[...] = (out + bout_ref[...]).astype(out_ref.dtype)


def _run_fused_mlp(x, bias_p, win_p, wout_p, bout_p):
    B, T, D = x.shape
    Hp = win_p.shape[1]
    Dp = wout_p.shape[1]
    bt = _pick_row_tile(T)

    # Constant operands: single-buffered, fetched once (index map is constant).
    const = lambda shape: pl.BlockSpec(shape, lambda b, r: (0, 0),
                                       pipeline_mode=pl.Buffered(1))

    return pl.pallas_call(
        _fused_mlp_kernel,
        out_shape=jax.ShapeDtypeStruct((B, T, Dp), jnp.float32),
        grid_spec=pltpu.PrefetchScalarGridSpec(
            num_scalar_prefetch=0,
            grid=(B, T // bt),
            in_specs=[
                pl.BlockSpec((None, bt, D), lambda b, r: (b, r, 0)),   # x rows, true D
                pl.BlockSpec((None, 1, Hp), lambda b, r: (b, 0, 0)),   # per-batch bias
                const((D, Hp)),                                        # win  (bf16)
                const((Hp, Dp)),                                       # wout (bf16)
                const((1, Dp)),                                        # bout (f32)
            ],
            out_specs=pl.BlockSpec((None, bt, Dp), lambda b, r: (b, r, 0)),
        ),
        compiler_params=pltpu.CompilerParams(
            # Both axes independent; "parallel" lets v7x's 2 TensorCores shard them.
            dimension_semantics=("parallel", "parallel"),
        ),
    )(x, bias_p, win_p, wout_p, bout_p)


# ----------------------------------------------------------------------------
# Hoisted (plain JAX) pieces + the synthetic base-model interface.
# ----------------------------------------------------------------------------
def _sinusoidal_embedding(t, dim):
    # t: (B,) int32 -> (B, dim) float32
    half = dim // 2
    freqs = jnp.exp(-jnp.log(10000.0) * jnp.arange(half, dtype=jnp.float32) / half)
    args = t.astype(jnp.float32)[:, None] * freqs[None, :]
    return jnp.concatenate([jnp.sin(args), jnp.cos(args)], axis=-1)


@jax.jit
def _interface_impl(params, x, t, cond_seq):
    p = params
    B, T, D = x.shape
    H = p["wt1"].shape[1]
    Hp = p["win_p"].shape[1]

    # --- Hoisted timestep / conditioning path: tiny batched XLA matmuls over B. ---
    temb = _sinusoidal_embedding(t, p["wt1"].shape[0])              # (B, T_DIM)
    h_t = temb @ p["wt1"]
    h_t = h_t * jax.nn.sigmoid(h_t)                                 # SiLU
    h_t = h_t @ p["wt2"]                                            # (B, H)
    # TODO(synk): unmasked mean assumes fixed-length conditioning sequences.
    c = jnp.mean(cond_seq, axis=1) @ p["wc"]                        # (B, H)
    bias = h_t + c + p["bin"]                                       # (B, H) f32
    # (B, 1, Hp): per-batch fused bias, consumed directly by the kernel's BlockSpec.
    bias_p = jnp.pad(bias, ((0, 0), (0, Hp - H)))[:, None, :]

    out_p = _run_fused_mlp(x, bias_p, p["win_p"], p["wout_p"], p["bout_p"])
    # Kernel output is lane-dense (Dp=128); slice back to the true feature width.
    return out_p[..., :D].astype(x.dtype)


class SyntheticBaseModel:
    """Stand-in for the diffusion base model; exposes `interface(x, t, cond)`."""

    def __init__(self, params):
        self.params = params

    def interface(self, x, t, cond):
        return _interface_impl(self.params, x, t, cond["input_sequence"])


class ConditionalWrapper:
    """JAX/Pallas equivalent of _ConditionalWrapper: forwards only (x, t)."""

    def __init__(self, base_model, cond):
        self.base_model = base_model
        self.cond = cond

    def __call__(self, x, t, **kwargs):
        return self.base_model.interface(x, t, self.cond)


def _init_params(key, d_in, hidden, t_dim):
    ks = jax.random.split(key, 5)
    scale = lambda fan_in: 1.0 / jnp.sqrt(jnp.float32(fan_in))
    d_p = _round_up(d_in, LANE)
    h_p = _round_up(hidden, LANE)

    win = jax.random.normal(ks[3], (d_in, hidden), jnp.float32) * scale(d_in)
    wout = jax.random.normal(ks[4], (hidden, d_in), jnp.float32) * scale(hidden)
    bout = jnp.zeros((d_in,), jnp.float32)

    return {
        # Hoisted (plain JAX) path: f32, unpadded.
        "wt1": jax.random.normal(ks[0], (t_dim, hidden), jnp.float32) * scale(t_dim),
        "wt2": jax.random.normal(ks[1], (hidden, hidden), jnp.float32) * scale(hidden),
        "wc": jax.random.normal(ks[2], (d_in, hidden), jnp.float32) * scale(d_in),
        "bin": jnp.zeros((hidden,), jnp.float32),
        # Kernel path: only the non-contraction output sides are padded to 128 lanes
        # (x itself is NOT padded); matmul weights in bf16, bias in f32.
        "win_p": jnp.pad(win, ((0, 0), (0, h_p - hidden))).astype(jnp.bfloat16),          # (D, Hp)
        "wout_p": jnp.pad(wout, ((0, h_p - hidden), (0, d_p - d_in))).astype(jnp.bfloat16),  # (Hp, Dp)
        "bout_p": jnp.pad(bout, (0, d_p - d_in)).reshape(1, d_p),                          # (1, Dp)
    }


if __name__ == "__main__":
    B, T, D = 2, 8, 32      # batch, frames, pose-feature channels
    Tc = 8                  # conditioning sequence length
    H = 64                  # hidden width
    T_DIM = 64              # sinusoidal timestep-embedding dim

    root = jax.random.PRNGKey(0)
    k_x, k_c, k_p = jax.random.split(root, 3)

    x = jax.random.normal(k_x, (B, T, D), jnp.float32)
    t = jnp.array([3, 17], dtype=jnp.int32)
    cond = {"input_sequence": jax.random.normal(k_c, (B, Tc, D), jnp.float32)}

    params = _init_params(k_p, D, H, T_DIM)
    model = ConditionalWrapper(SyntheticBaseModel(params), cond)

    out = model(x, t)
    jax.block_until_ready(out)
    assert out.shape == (B, T, D)
    assert bool(jnp.isfinite(out).all())
    print("KERNEL_OK")
</pallas_src>

<mosaic_0001>
module attributes {stable_mosaic.version = 11 : i64} {
  func.func @_fused_mlp_kernel(%arg0: i32, %arg1: i32, %arg2: memref<1x8x32xf32, #tpu.memory_space<vmem>>, %arg3: memref<1x1x128xf32, #tpu.memory_space<vmem>>, %arg4: memref<32x128xbf16, #tpu.memory_space<vmem>>, %arg5: memref<128x128xbf16, #tpu.memory_space<vmem>>, %arg6: memref<1x128xf32, #tpu.memory_space<vmem>>, %arg7: memref<1x8x128xf32, #tpu.memory_space<vmem>>) attributes {dimension_semantics = [#tpu.dimension_semantics<parallel>, #tpu.dimension_semantics<parallel>], iteration_bounds = array<i64: 2, 1>, scalar_prefetch = 0 : i64, scratch_operands = 0 : i64, tpu.core_type = #tpu.core_type<tc>, window_params = [{transform_indices = @transform_0, window_bounds = array<i64: 1, 8, 32>}, {transform_indices = @transform_1, window_bounds = array<i64: 1, 1, 128>}, {pipeline_mode = #tpu.pipeline_mode<synchronous>, transform_indices = @transform_2, window_bounds = array<i64: 32, 128>}, {pipeline_mode = #tpu.pipeline_mode<synchronous>, transform_indices = @transform_3, window_bounds = array<i64: 128, 128>}, {pipeline_mode = #tpu.pipeline_mode<synchronous>, transform_indices = @transform_4, window_bounds = array<i64: 1, 128>}, {transform_indices = @transform_5, window_bounds = array<i64: 1, 8, 128>}]} {
    %c0 = arith.constant 0 : index
    %c0_0 = arith.constant 0 : index
    %c0_1 = arith.constant 0 : index
    %0 = vector.load %arg2[%c0, %c0_0, %c0_1] : memref<1x8x32xf32, #tpu.memory_space<vmem>>, vector<1x8x32xf32>
    %1 = vector.shape_cast %0 : vector<1x8x32xf32> to vector<8x32xf32>
    %2 = arith.truncf %1 : vector<8x32xf32> to vector<8x32xbf16>
    %c0_2 = arith.constant 0 : index
    %c0_3 = arith.constant 0 : index
    %3 = vector.load %arg4[%c0_2, %c0_3] : memref<32x128xbf16, #tpu.memory_space<vmem>>, vector<32x128xbf16>
    %cst = arith.constant dense<0.000000e+00> : vector<8x128xf32>
    %4 = tpu.matmul %2, %3, %cst {dimension_numbers = #tpu.dot_dimension_numbers<[1], [0], [0], [1], [0, 0, 1, 1], [], []>} : vector<8x32xbf16>, vector<32x128xbf16>, vector<8x128xf32> -> vector<8x128xf32>
    %c0_4 = arith.constant 0 : index
    %c0_5 = arith.constant 0 : index
    %c0_6 = arith.constant 0 : index
    %5 = vector.load %arg3[%c0_4, %c0_5, %c0_6] : memref<1x1x128xf32, #tpu.memory_space<vmem>>, vector<1x1x128xf32>
    %6 = vector.shape_cast %5 : vector<1x1x128xf32> to vector<1x128xf32>
    %7 = vector.broadcast %6 : vector<1x128xf32> to vector<8x128xf32>
    %8 = arith.addf %4, %7 : vector<8x128xf32>
    %9 = arith.mulf %8, %8 : vector<8x128xf32>
    %10 = arith.mulf %8, %9 : vector<8x128xf32>
    %cst_7 = arith.constant 4.471500e-02 : f32
    %11 = vector.broadcast %cst_7 : f32 to vector<8x128xf32>
    %12 = arith.mulf %11, %10 : vector<8x128xf32>
    %13 = arith.addf %8, %12 : vector<8x128xf32>
    %cst_8 = arith.constant 0.797884583 : f32
    %14 = vector.broadcast %cst_8 : f32 to vector<8x128xf32>
    %15 = arith.mulf %14, %13 : vector<8x128xf32>
    %16 = math.tanh %15 : vector<8x128xf32>
    %cst_9 = arith.constant 1.000000e+00 : f32
    %17 = vector.broadcast %cst_9 : f32 to vector<8x128xf32>
    %18 = arith.addf %17, %16 : vector<8x128xf32>
    %cst_10 = arith.constant 5.000000e-01 : f32
    %19 = vector.broadcast %cst_10 : f32 to vector<8x128xf32>
    %20 = arith.mulf %19, %18 : vector<8x128xf32>
    %21 = arith.mulf %8, %20 : vector<8x128xf32>
    %22 = arith.truncf %21 : vector<8x128xf32> to vector<8x128xbf16>
    %c0_11 = arith.constant 0 : index
    %c0_12 = arith.constant 0 : index
    %23 = vector.load %arg5[%c0_11, %c0_12] : memref<128x128xbf16, #tpu.memory_space<vmem>>, vector<128x128xbf16>
    %cst_13 = arith.constant dense<0.000000e+00> : vector<8x128xf32>
    %24 = tpu.matmul %22, %23, %cst_13 {dimension_numbers = #tpu.dot_dimension_numbers<[1], [0], [0], [1], [0, 0, 1, 1], [], []>} : vector<8x128xbf16>, vector<128x128xbf16>, vector<8x128xf32> -> vector<8x128xf32>
    %c0_14 = arith.constant 0 : index
    %c0_15 = arith.constant 0 : index
    %25 = vector.load %arg6[%c0_14, %c0_15] : memref<1x128xf32, #tpu.memory_space<vmem>>, vector<1x128xf32>
    %26 = vector.broadcast %25 : vector<1x128xf32> to vector<8x128xf32>
    %27 = arith.addf %24, %26 : vector<8x128xf32>
    %c0_16 = arith.constant 0 : index
    %c0_17 = arith.constant 0 : index
    %c0_18 = arith.constant 0 : index
    %28 = vector.load %arg7[%c0_16, %c0_17, %c0_18] : memref<1x8x128xf32, #tpu.memory_space<vmem>>, vector<1x8x128xf32>
    %29 = vector.shape_cast %28 : vector<1x8x128xf32> to vector<8x128xf32>
    %30 = vector.shape_cast %27 : vector<8x128xf32> to vector<1x8x128xf32>
    tpu.vector_store %arg7[%c0_16, %c0_17, %c0_18], %30 {strides = array<i32>} : memref<1x8x128xf32, #tpu.memory_space<vmem>>, vector<1x8x128xf32>,
    return
  }
  func.func @transform_0(%arg0: i32, %arg1: i32) -> (i32, i32, i32) {
    %c0_i32 = arith.constant 0 : i32
    %c0_i32_0 = arith.constant 0 : i32
    return %arg0, %arg1, %c0_i32 : i32, i32, i32
  }
  func.func @transform_1(%arg0: i32, %arg1: i32) -> (i32, i32, i32) {
    %c0_i32 = arith.constant 0 : i32
    %c0_i32_0 = arith.constant 0 : i32
    %c0_i32_1 = arith.constant 0 : i32
    return %arg0, %c0_i32, %c0_i32_0 : i32, i32, i32
  }
  func.func @transform_2(%arg0: i32, %arg1: i32) -> (i32, i32) {
    %c0_i32 = arith.constant 0 : i32
    %c0_i32_0 = arith.constant 0 : i32
    %c0_i32_1 = arith.constant 0 : i32
    return %c0_i32, %c0_i32_0 : i32, i32
  }
  func.func @transform_3(%arg0: i32, %arg1: i32) -> (i32, i32) {
    %c0_i32 = arith.constant 0 : i32
    %c0_i32_0 = arith.constant 0 : i32
    %c0_i32_1 = arith.constant 0 : i32
    return %c0_i32, %c0_i32_0 : i32, i32
  }
  func.func @transform_4(%arg0: i32, %arg1: i32) -> (i32, i32) {
    %c0_i32 = arith.constant 0 : i32
    %c0_i32_0 = arith.constant 0 : i32
    %c0_i32_1 = arith.constant 0 : i32
    return %c0_i32, %c0_i32_0 : i32, i32
  }
  func.func @transform_5(%arg0: i32, %arg1: i32) -> (i32, i32, i32) {
    %c0_i32 = arith.constant 0 : i32
    %c0_i32_0 = arith.constant 0 : i32
    return %arg0, %arg1, %c0_i32 : i32, i32, i32
  }
}

</mosaic_0001>

<bundles_post_ra>
// kernel: _interface_impl.1
= control target key start
LH: loop header
LB: loop body
LE: loop exit
PB: predicated region body
PF: predicated region fallthrough
CT: control target
= control target key end

     0   :  { %10 = vsyncpa [#allocation3], 0  ;;  %s941_s0 = inlined_call_operand.vmem [shape: f32[2,8,32], index: 0, kind: input, shape index: {}]   ;;  %s942_s1 = inlined_call_operand.vmem [shape: f32[2,1,128], index: 1, kind: input, shape index: {}]   ;;  %s943_s2 = inlined_call_operand.vmem [shape: bf16[32,128], index: 2, kind: input, shape index: {}]   ;;  %s944_s3 = inlined_call_operand.vmem [shape: bf16[128,128], index: 3, kind: input, shape index: {}]   ;;  %s945_s4 = inlined_call_operand.vmem [shape: f32[1,128], index: 4, kind: input, shape index: {}]   ;;  %s946_s5 = inlined_call_operand.hbm [shape: f32[2,8,128], index: 5, kind: output, shape index: {}]  }
   0x1   :  { %12 = vsyncpa [#allocation3 + $0x1], 0  ;;  %s790_s18 = smov 0   ;;  %s792_s19 = smov 0  }
   0x2   :  { %s794_s20 = smov 0   ;;  %s796_s21 = smov 0  }
   0x3   :  { %s798_s22 = smov 0   ;;  %s800_s23 = smov 0  }
   0x4 LB: > { %s546_s24 = sadd.s32 4294967295, %s755_s23   ;;  %s547_s25 = sadd.s32 4294967294, %s755_s23   ;;  %s755_s23 = sphi %s800_s23, %s18_s23   ;;  %s751_s22 = sphi %s798_s22, %s953_s22   ;;  %s747_s21 = sphi %s796_s21, %s952_s21   ;;  %s743_s20 = sphi %s794_s20, %s951_s20   ;;  %s739_s19 = sphi %s792_s19, %s950_s19   ;;  %s735_s18 = sphi %s790_s18, %s949_s18  }
   0x5   : > { %s30_s26 = sadd.s32 1, %s751_s22  ;;  %s156_s27 = sadd.s32 1, %s743_s20 }
   0x6   : > { %p32_p0 = scmp.ge.s32.totalorder %s30_s26, 2  ;;  %p166_p1 = scmp.ne.s32.totalorder %s743_s20, %s739_s19 }
   0x7   : > { %p167_p2 = scmp.eq.s32.totalorder %s546_s24, 1  ;;  %p172_p3 = scmp.ne.s32.totalorder %s739_s19, %s735_s18 }
   0x8   : > { %s955_s26 = smov (%p32_p0, %s30_s26), 0  ;;  %p173_p5 = scmp.eq.s32.totalorder %s547_s25, 1 }
   0x9   : > { %p830_p4 = por %p167_p2, %p166_p1  ;;  %s151_s29 = ssub.s32 %s751_s22, %s955_s26 }
   0xa   : > { %p550_p6 = scmp.ge.s32.totalorder %s755_s23, 1  ;;  %p154_p7 = scmp.eq.s32.totalorder %s151_s29, 0 }
   0xb   : > { %p837_p8 = por %p173_p5, %p172_p3  ;;  %p216_p9 = scmp.lt.s32.totalorder %s755_s23, 3 }
   0xc   : > { %s843_s6 = scalar_select %p154_p7, %s743_s20, %s156_s27  }
   0xd   : > { %p217_p10 = pnand %p550_p6, %p216_p9 }
   0xe   : > { %p249_p11 = scmp.lt.s32.totalorder (!%p217_p10), %s747_s21, 1  ;;  %s567_s9 = sshll.u32 (!%p217_p10), %s747_s21, 7 }
   0xf   : > { %220 = sbr.rel (%p217_p10) target bundleno = 465 (0x1d1), region = 40 }
  0x14   : > { %v667_v0 = vld [vmem:[%s943_s2 + $0x8] sm:$0xff]   ;;  %v757_v1 = vmov 0.0   ;;  %v668_v2 = vld [vmem:[%s943_s2] sm:$0xff]   ;;  %vm758_vm0 = vmmov 0   ;;  %s853_s11 = scalar_select %p249_p11, %s747_s21, 1  ;;  %vm285_vm1 = vcmask 261120  }
  0x15   : > { %582 = vmatprep.subr.bf16.mxu0 %v757_v1  ;;  %590 = vmatprep.subr.bf16.mxu1 %v757_v1  ;;  %v669_v5 = vld [vmem:[%s944_s3 + $0x38] sm:$0xff]   ;;  %v670_v6 = vld [vmem:[%s944_s3 + $0x30] sm:$0xff]   ;;  %v671_v7 = vld [vmem:[%s944_s3 + $0x28] sm:$0xff]   ;;  %s759_s21 = smov [#allocation2]  }
  0x16   : > { %583 = vmatpush3.bf16.msra.mxu0 %v667_v0  ;;  %586 = vmatprep.mubr.msk.bf16.mxu0 %vm758_vm0, %v757_v1  ;;  %s552_s12 = sshll.u32 %s853_s11, 3  ;;  %v672_v8 = vld [vmem:[%s944_s3 + $0x20] sm:$0xff]   ;;  %v673_v9 = vld [vmem:[%s944_s3 + $0x18] sm:$0xff]   ;;  %v674_v10 = vld [vmem:[%s944_s3 + $0x10] sm:$0xff]   ;;  %s258_s27 = scalar_lea.vmem %s942_s1, %s853_s11 }
  0x17   : > { %584 = vmatprep.subr.bf16.mxu0 %v757_v1  ;;  %606 = vmatprep.mubr.msk.bf16.mxu1 %vm758_vm0, %v757_v1  ;;  %s255_s15 = scalar_lea.vmem %s941_s0, %s552_s12  ;;  %v675_v11 = vld [vmem:[%s944_s3 + $0x8] sm:$0xff]   ;;  %v676_v12 = vld [vmem:[%s944_s3] sm:$0xff]   ;;  %s246_s11 = sand.u32 1, %s739_s19  }
  0x18   : > { %v260_v3 = vld [vmem:[%s255_s15] sm:$0xff]  ;;  %591 = vmatpush3.bf16.msra.mxu1 %v669_v5  ;;  %s551_s29 = sshll.u32 %s246_s11, 3  ;;  %s895_s15 = scalar_lea.hbm %s946_s5, %s567_s9 }
  0x19   : > { %v261_v4 = vpack.c.bf16 %v260_v3, %v260_v3  ;;  %592 = vmatprep.subr.bf16.mxu1 %v757_v1  ;;  %v553_v13 = vld [vmem:[%s258_s27] ss:$0 sm:$0xff]  ;;  %s248_s10 = scalar_lea.vmem [#allocation2], %s551_s29  ;;  %s452_s16 = scalar_lea.sflag [#allocation3], %s246_s11 }
  0x1a   : > { %585 = vmatpush3.bf16.msra.mxu0 %v668_v2  ;;  %v557_v29 = vld [vmem:[%s945_s4] ss:$0 sm:$0xff]  ;;  %s466_s12 = sshll.u32 %s248_s10, 4  ;;  %s683_s24 = sshll.u32 %s759_s21, 4  ;;  %s897_s12 = int_to_ptr.vmem [resolvable:$true] %s466_s12  ;;  %s684_s24 = int_to_ptr.vmem [resolvable:$false] %s683_s24 }
  0x1b   : > { %s679_s17 = scalar_lea.vmem %s897_s12, 128  ;;  %s685_s25 = scalar_lea.vmem %s684_s24, 256 }
  0x1c   : > { %593 = vmatpush3.bf16.msra.mxu1 %v670_v6  ;;  %p680_p12 = scmp.ne.s32.totalorder %s897_s12, %s679_s17  ;;  %p686_p1 = scmp.lt.s32.totalorder %s897_s12, %s684_s24 }
  0x1d   : > { %587 = vmatmul.mubr.msk.bf16.vlgmr.msra.gmra.mxu0 %vm285_vm1, %v261_v4  ;;  %594 = vmatprep.subr.bf16.mxu1 %v757_v1  ;;  %p687_p2 = scmp.lt.s32.totalorder %s685_s25, %s679_s17 }
  0x1e   : > { %p681_p13 = pnand %p680_p12, %p830_p4 }
  0x1f   : > { %p688_p3 = por %p687_p2, %p686_p1 }
  0x20   : > { %595 = vmatpush3.bf16.msra.mxu1 %v671_v7  ;;  %p682_p0 = pneg %p681_p13 }
  0x21   : > { %596 = vmatprep.subr.bf16.mxu1 %v757_v1 }
  0x22   : > { %p689_p5 = pnand %p688_p3, %p682_p0 }
  0x24   : > { %597 = vmatpush3.bf16.msra.mxu1 %v672_v8 }
  0x25   : > { %598 = vmatprep.subr.bf16.mxu1 %v757_v1 }
  0x28   : > { %599 = vmatpush3.bf16.msra.mxu1 %v673_v9 }
  0x29   : > { %600 = vmatprep.subr.bf16.mxu1 %v757_v1 }
  0x2c   : > { %601 = vmatpush3.bf16.msra.mxu1 %v674_v10 }
  0x2d   : > { %602 = vmatprep.subr.bf16.mxu1 %v757_v1 }
  0x30   : > { %603 = vmatpush3.bf16.msra.mxu1 %v675_v11 }
  0x31   : > { %604 = vmatprep.subr.bf16.mxu1 %v757_v1 }
  0x34   : > { %605 = vmatpush3.bf16.msra.mxu1 %v676_v12 }
  0xdd   : > { %v323_v14 = vpop.f32.mrf.mxu0 }
  0xde   : > { %v324_v15 = vadd.f32 %v553_v13, %v323_v14 }
  0xdf   : > { %v588_v16 = vpop.f32.mrf.mxu0 }
  0xe0   : > { %v329_v17 = vmul.f32 %v324_v15, %v324_v15 }
  0xe1   : > { %v326_v18 = vpop.f32.mrf.mxu0 }
  0xe2   : > { %v330_v19 = vmul.f32 %v329_v17, %v324_v15 }
  0xe3   : > { %v589_v20 = vpop.f32.mrf.mxu0 }
  0xe4   : > { %v331_v21 = vmul.f32 0.044715, %v330_v19 }
  0xe6   : > { %v332_v22 = vadd.f32 %v331_v21, %v324_v15 }
  0xe8   : > { %v333_v23 = vmul.f32 0.7978846, %v332_v22 }
  0xea   : > { %677 = vtanh.f32 %v333_v23 }
  0xf7   : > { %v678_v24 = vpop.eup %677 }
  0xf8   : > { %v335_v25 = vadd.f32 1.0, %v678_v24 }
  0xfa   : > { %v336_v26 = vmul.f32 0.5, %v335_v25 }
  0xfc   : > { %v337_v27 = vmul.f32 %v336_v26, %v324_v15 }
  0xfe   : > { %v338_v28 = vpack.c.bf16 %v337_v27, %v337_v27 }
 0x100   : > { %607 = vmatmul.mubr.bf16.vlgmr.msra.gmra.mxu1 %v338_v28 }
 0x1c0   : > { %v444_v30 = vpop.f32.mrf.mxu1 }
 0x1c1   : > { %v445_v31 = vadd.f32 %v557_v29, %v444_v30 }
 0x1c2   : > { %v608_v32 = vpop.f32.mrf.mxu1 }
 0x1c3   : > { %450 = vst [vmem:[%s248_s10] sm:$0xff] %v445_v31 }
 0x1c4   : > { %v447_v33 = vpop.f32.mrf.mxu1 }
 0x1c5   : > { %692 = shalt.err (!%p689_p5)
}
 0x1c6   : > { %s693_s27 = scalar_lea.hbm %s895_s15, 128  ;;  %s697_s7 = scalar_lea.hbm %s946_s5, 256 }
 0x1c7   : > { %p694_p6 = scmp.ne.s32.totalorder %s895_s15, %s693_s27  ;;  %p698_p10 = scmp.lt.s32.totalorder %s895_s15, %s946_s5 }
 0x1c8   : > { %p699_p11 = scmp.lt.s32.totalorder %s697_s7, %s693_s27 }
 0x1c9   : > { %p695_p7 = pnand %p694_p6, %p830_p4 }
 0x1ca   : > { %p700_p12 = por %p699_p11, %p698_p10 }
 0x1cb   : > { %p696_p9 = pneg %p695_p7 }
 0x1cd   : > { %p701_p13 = pnand %p700_p12, %p696_p9 }
 0x1cf   : > { %704 = shalt.err (!%p701_p13)
}
 0x1d0   : > { %610 = dma.vmem_to_hbm [thread:$0]  (%p830_p4), %s897_s12, 128, %s895_s15, %s452_s16   ;;  %v609_v34 = vpop.f32.mrf.mxu1 }
 0x1d1 PF: > { %p616_p0 = scmp.ge.s32.totalorder %s755_s23, 2  ;;  %s478_s10 = sand.u32 1, %s735_s18  }
 0x1d2   : > { %s479_s13 = scalar_lea.sflag [#allocation3], %s478_s10 }
 0x1d3   : > { %p613_p1 = pnand %p616_p0, %p837_p8 }
 0x1d5   : > { %p614_p2 = pneg %p613_p1 }
 0x1d7   : > { %730 = dma.done.wait (%p614_p2), %s479_s13, 128  }
 0x1d8   : > { %732 = vsyncadd (%p614_p2), %s479_s13, 4294967168  ;;  %s18_s23 = sadd.s32 1, %s755_s23   ;;  %s949_s18 = smov %s739_s19 }
 0x1d9   : > { %p15_p3 = scmp.ge.s32.totalorder %s18_s23, 4   ;;  %s950_s19 = smov %s743_s20 }
 0x1da   : > { %s951_s20 = smov %s843_s6  ;;  %s952_s21 = smov %s751_s22 }
 0x1db   : > { %s953_s22 = smov %s955_s26  ;;  %17 = sbr.rel (!%p15_p3) target bundleno = 4 (0x4), region = 78 }
 0x1e0   :  { %484 = vsyncpa [#allocation3], 1 }
 0x1e1   :  { %486 = vsyncpa [#allocation3 + $0x1], 1 }

</bundles_post_ra>
